<compile_context>
chip_gen: v7x
topology: tpu7x:2x2x1
jax: 0.10.0
libtpu: 0.0.40
codegen_flags: <defaults>
</compile_context>

<pallas_src>
import functools
import math

import jax
import jax.numpy as jnp
from jax.experimental import pallas as pl
from jax.experimental.pallas import tpu as pltpu

_MAX_UNROLL_C = 8


def _normalize_kernel(x_ref, o_ref, *, p, eps, unroll_c):
    """One (TO, C, L) block: y = x / max(||x||_p over axis 1, eps)."""
    if p == 2.0:
        if unroll_c:
            # Per-channel squares/adds straight from the VMEM ref: pure VPU
            # work, avoids the XLU sublane reduce over half-empty tiles.
            c0 = x_ref[:, 0, :].astype(jnp.float32)
            sumsq = c0 * c0
            for ci in range(1, x_ref.shape[1]):
                xc = x_ref[:, ci, :].astype(jnp.float32)
                sumsq = sumsq + xc * xc
            sumsq = sumsq[:, None, :]                     # (TO, 1, L)
        else:
            x32 = x_ref[...].astype(jnp.float32)
            sumsq = jnp.sum(x32 * x32, axis=1, keepdims=True)
        # rsqrt(max(sumsq, eps^2)) == 1 / max(||x||_2, eps); EUP op, f32 clamp.
        inv = jax.lax.rsqrt(jnp.maximum(sumsq, eps * eps))
        o_ref[...] = (x_ref[...].astype(jnp.float32) * inv).astype(o_ref.dtype)
    elif p == 1.0:
        x32 = x_ref[...].astype(jnp.float32)
        norm = jnp.sum(jnp.abs(x32), axis=1, keepdims=True)
        o_ref[...] = (x32 / jnp.maximum(norm, eps)).astype(o_ref.dtype)
    else:
        x32 = x_ref[...].astype(jnp.float32)
        norm = jnp.sum(jnp.abs(x32) ** p, axis=1, keepdims=True) ** (1.0 / p)
        o_ref[...] = (x32 / jnp.maximum(norm, eps)).astype(o_ref.dtype)


def pallas_normalize(x, p=2.0, dim=1, eps=1e-12, target_block_bytes=2 << 20):
    """F.normalize(x, p, dim, eps) for any rank; reduction axis = `dim`."""
    nd = x.ndim
    dim = dim % nd
    shape = x.shape
    outer = math.prod(shape[:dim]) if dim > 0 else 1
    c = shape[dim]
    inner = math.prod(shape[dim + 1:]) if dim + 1 < nd else 1

    # View as (outer, C, inner): reduce over axis 1, `inner` stays last (lanes).
    x3 = x.reshape(outer, c, inner)

    # Lane-density guard: pad the lane axis to a multiple of 128 so stores are
    # unmasked vst's.  Padded lanes see all-zero channels -> norm clamps to
    # eps -> output 0, and are sliced off afterwards.
    inner_p = inner
    if inner % 128 != 0:
        inner_p = ((inner + 127) // 128) * 128
        x3 = jnp.pad(x3, ((0, 0), (0, 0), (0, inner_p - inner)))

    # Tile `outer` into ~target_block_bytes blocks (per-grid-step overhead is
    # ~0.35 us, so tiny blocks are pure launch/DMA overhead).  ~2 MiB default
    # keeps the double-buffered in+out working set (~4x) well inside every
    # generation's scoped-VMEM default.
    bytes_per_row = c * inner_p * x3.dtype.itemsize
    to = max(1, min(outer, target_block_bytes // max(1, bytes_per_row)))
    grid = (pl.cdiv(outer, to),)

    kernel = functools.partial(
        _normalize_kernel,
        p=float(p),
        eps=float(eps),
        unroll_c=(float(p) == 2.0 and c <= _MAX_UNROLL_C),
    )

    out = pl.pallas_call(
        kernel,
        out_shape=jax.ShapeDtypeStruct((outer, c, inner_p), x3.dtype),
        grid=grid,
        in_specs=[pl.BlockSpec((to, c, inner_p), lambda i: (i, 0, 0))],
        out_specs=pl.BlockSpec((to, c, inner_p), lambda i: (i, 0, 0)),
        compiler_params=pltpu.CompilerParams(
            dimension_semantics=("parallel",)),
    )(x3)

    if inner_p != inner:
        out = out[:, :, :inner]
    return out.reshape(shape)


def _ref_normalize(x, p=2.0, dim=1, eps=1e-12):
    norm = jnp.sum(jnp.abs(x.astype(jnp.float32)) ** p, axis=dim,
                   keepdims=True) ** (1.0 / p)
    return (x.astype(jnp.float32) / jnp.maximum(norm, eps)).astype(x.dtype)


if __name__ == "__main__":
    key = jax.random.PRNGKey(0)

    # NCHW input like the PyTorch module would see: batch=2, channels=4, 16x16.
    x = jax.random.normal(key, (2, 4, 16, 16), jnp.float32)
    y = jax.block_until_ready(pallas_normalize(x, p=2.0, dim=1, eps=1e-12))
    ref = _ref_normalize(x, p=2.0, dim=1, eps=1e-12)
    assert y.shape == x.shape, y.shape
    assert bool(jnp.all(jnp.isfinite(y)))
    assert bool(jnp.allclose(y, ref, atol=1e-5, rtol=1e-5))

    # Exercise multi-step grid + partial last outer block.
    x2 = jax.random.normal(jax.random.PRNGKey(1), (5, 4, 16, 16), jnp.float32)
    y2 = jax.block_until_ready(
        pallas_normalize(x2, p=2.0, dim=1, eps=1e-12, target_block_bytes=8192))
    ref2 = _ref_normalize(x2, p=2.0, dim=1, eps=1e-12)
    assert bool(jnp.allclose(y2, ref2, atol=1e-5, rtol=1e-5))

    print("KERNEL_OK")
</pallas_src>

<mosaic_0001>
module attributes {stable_mosaic.version = 11 : i64} {
  func.func @_normalize_kernel(%arg0: i32, %arg1: memref<2x4x256xf32, #tpu.memory_space<vmem>>, %arg2: memref<2x4x256xf32, #tpu.memory_space<vmem>>) attributes {dimension_semantics = [#tpu.dimension_semantics<parallel>], iteration_bounds = array<i64: 1>, scalar_prefetch = 0 : i64, scratch_operands = 0 : i64, tpu.core_type = #tpu.core_type<tc>, window_params = [{transform_indices = @transform_0, window_bounds = array<i64: 2, 4, 256>}, {transform_indices = @transform_1, window_bounds = array<i64: 2, 4, 256>}]} {
    %c0 = arith.constant 0 : index
    %c0_0 = arith.constant 0 : index
    %c0_1 = arith.constant 0 : index
    %0 = vector.load %arg1[%c0, %c0_0, %c0_1] : memref<2x4x256xf32, #tpu.memory_space<vmem>>, vector<2x1x256xf32>
    %1 = vector.shape_cast %0 : vector<2x1x256xf32> to vector<2x256xf32>
    %2 = arith.mulf %1, %1 : vector<2x256xf32>
    %c0_2 = arith.constant 0 : index
    %c1 = arith.constant 1 : index
    %c0_3 = arith.constant 0 : index
    %3 = vector.load %arg1[%c0_2, %c1, %c0_3] : memref<2x4x256xf32, #tpu.memory_space<vmem>>, vector<2x1x256xf32>
    %4 = vector.shape_cast %3 : vector<2x1x256xf32> to vector<2x256xf32>
    %5 = arith.mulf %4, %4 : vector<2x256xf32>
    %6 = arith.addf %2, %5 : vector<2x256xf32>
    %c0_4 = arith.constant 0 : index
    %c2 = arith.constant 2 : index
    %c0_5 = arith.constant 0 : index
    %7 = vector.load %arg1[%c0_4, %c2, %c0_5] : memref<2x4x256xf32, #tpu.memory_space<vmem>>, vector<2x1x256xf32>
    %8 = vector.shape_cast %7 : vector<2x1x256xf32> to vector<2x256xf32>
    %9 = arith.mulf %8, %8 : vector<2x256xf32>
    %10 = arith.addf %6, %9 : vector<2x256xf32>
    %c0_6 = arith.constant 0 : index
    %c3 = arith.constant 3 : index
    %c0_7 = arith.constant 0 : index
    %11 = vector.load %arg1[%c0_6, %c3, %c0_7] : memref<2x4x256xf32, #tpu.memory_space<vmem>>, vector<2x1x256xf32>
    %12 = vector.shape_cast %11 : vector<2x1x256xf32> to vector<2x256xf32>
    %13 = arith.mulf %12, %12 : vector<2x256xf32>
    %14 = arith.addf %10, %13 : vector<2x256xf32>
    %15 = vector.shape_cast %14 : vector<2x256xf32> to vector<2x1x256xf32>
    %cst = arith.constant 1.000000e-24 : f32
    %16 = vector.broadcast %cst : f32 to vector<2x1x256xf32>
    %17 = arith.maximumf %15, %16 : vector<2x1x256xf32>
    %18 = math.rsqrt %17 : vector<2x1x256xf32>
    %c0_8 = arith.constant 0 : index
    %c0_9 = arith.constant 0 : index
    %c0_10 = arith.constant 0 : index
    %19 = vector.load %arg1[%c0_8, %c0_9, %c0_10] : memref<2x4x256xf32, #tpu.memory_space<vmem>>, vector<2x4x256xf32>
    %20 = vector.broadcast %18 : vector<2x1x256xf32> to vector<2x4x256xf32>
    %21 = arith.mulf %19, %20 : vector<2x4x256xf32>
    %c0_11 = arith.constant 0 : index
    %c0_12 = arith.constant 0 : index
    %c0_13 = arith.constant 0 : index
    %22 = vector.load %arg2[%c0_11, %c0_12, %c0_13] : memref<2x4x256xf32, #tpu.memory_space<vmem>>, vector<2x4x256xf32>
    tpu.vector_store %arg2[%c0_11, %c0_12, %c0_13], %21 {strides = array<i32>} : memref<2x4x256xf32, #tpu.memory_space<vmem>>, vector<2x4x256xf32>,
    return
  }
  func.func @transform_0(%arg0: i32) -> (i32, i32, i32) {
    %c0_i32 = arith.constant 0 : i32
    %c0_i32_0 = arith.constant 0 : i32
    %c0_i32_1 = arith.constant 0 : i32
    return %arg0, %c0_i32, %c0_i32_0 : i32, i32, i32
  }
  func.func @transform_1(%arg0: i32) -> (i32, i32, i32) {
    %c0_i32 = arith.constant 0 : i32
    %c0_i32_0 = arith.constant 0 : i32
    %c0_i32_1 = arith.constant 0 : i32
    return %arg0, %c0_i32, %c0_i32_0 : i32, i32, i32
  }
}

</mosaic_0001>

<bundles_post_ra>
// kernel: tpu_custom_call.1
= control target key start
LH: loop header
LB: loop body
LE: loop exit
PB: predicated region body
PF: predicated region fallthrough
CT: control target
= control target key end

     0   :  { %6 = vsyncpa [#allocation3], 0  ;;  %s201_s0 = inlined_call_operand.hbm [shape: f32[2,4,256], index: 0, kind: input, shape index: {}]   ;;  %s202_s1 = inlined_call_operand.hbm [shape: f32[2,4,256], index: 1, kind: output, shape index: {}]  }
   0x1   :  { %7 = vsyncpa [#allocation4], 0  ;;  %s157_s6 = smov [#allocation2]   ;;  %s109_s10 = scalar_lea.hbm %s201_s0, 256 }
   0x2   :  { %s13_s7 = sshll.u32 %s157_s6, 4  ;;  %p110_p0 = scmp.ne.s32.totalorder %s201_s0, %s109_s10  ;;  %s14_s7 = int_to_ptr.vmem [resolvable:$true] %s13_s7 }
   0x3   :  { %p113_p1 = scmp.lt.u32.totalorder %s109_s10, %s201_s0 }
   0x5   :  { %p115_p2 = pnand %p113_p1, %p110_p0 }
   0x7   :  { %118 = shalt.err (!%p115_p2)
}
   0x8   :  { %s119_s15 = scalar_lea.vmem %s14_s7, 256  ;;  %p124_p4 = scmp.lt.s32.totalorder %s14_s7, %s14_s7 }
   0x9   :  { %p120_p3 = scmp.ne.s32.totalorder %s14_s7, %s119_s15  ;;  %p125_p5 = scmp.lt.s32.totalorder %s119_s15, %s119_s15 }
   0xb   :  { %p126_p6 = por %p125_p5, %p124_p4 }
   0xd   :  { %p127_p7 = pnand %p126_p6, %p120_p3 }
   0xf   :  { %130 = shalt.err (!%p127_p7)
}
  0x10   :  { %s158_s16 = smov 128   ;;  %s159_s17 = smov 8  }
  0x11   :  { %19 = dma.hbm_to_vmem [thread:$0]  %s201_s0, 256, %s14_s7, [#allocation3], %s158_s16, %s158_s16, %s159_s17  }
  0x12   :  { %153 = dma.done.wait [#allocation3], 256  }
  0x13   :  { %154 = vsyncadd [#allocation3], 4294967040  ;;  %v23_v0 = vld [vmem:[#allocation2] ss:$4 sm:$0x3]  ;;  %v60_v22 = vlaneseq  ;;  %v57_v37 = vld [vmem:[#allocation2 + $0x8] sm:$0xff] }
  0x14   :  { %v29_v1 = vld [vmem:[#allocation2 + $0x1] ss:$4 sm:$0x3]  ;;  %v26_v2 = vmul.f32 %v23_v0, %v23_v0  ;;  %v37_v4 = vld [vmem:[#allocation2 + $0x2] ss:$4 sm:$0x3] }
  0x15   :  { %v32_v3 = vmul.f32 %v29_v1, %v29_v1  ;;  %v45_v5 = vld [vmem:[#allocation2 + $0x3] ss:$4 sm:$0x3]  ;;  %v40_v6 = vmul.f32 %v37_v4, %v37_v4  ;;  %v25_v7 = vld [vmem:[#allocation2 + $0x8] ss:$4 sm:$0x3] }
  0x16   :  { %v48_v9 = vmul.f32 %v45_v5, %v45_v5  ;;  %v27_v10 = vmul.f32 %v25_v7, %v25_v7  ;;  %v31_v11 = vld [vmem:[#allocation2 + $0x9] ss:$4 sm:$0x3]  ;;  %v39_v12 = vld [vmem:[#allocation2 + $0xa] ss:$4 sm:$0x3] }
  0x17   :  { %v34_v8 = vadd.f32 %v32_v3, %v26_v2  ;;  %v33_v13 = vmul.f32 %v31_v11, %v31_v11  ;;  %v41_v14 = vmul.f32 %v39_v12, %v39_v12  ;;  %v47_v15 = vld [vmem:[#allocation2 + $0xb] ss:$4 sm:$0x3]  ;;  %v61_v25 = vshrl.u32 %v60_v22, 7  ;;  %v56_v31 = vld [vmem:[#allocation2] sm:$0xff]  ;;  %s160_s0 = smov [#allocation5]  }
  0x18   :  { %v49_v18 = vmul.f32 %v47_v15, %v47_v15  ;;  %s89_s20 = sshll.u32 %s160_s0, 4  ;;  %s90_s20 = int_to_ptr.vmem [resolvable:$true] %s89_s20 }
  0x19   :  { %v42_v16 = vadd.f32 %v40_v6, %v34_v8  ;;  %v35_v17 = vadd.f32 %v33_v13, %v27_v10  ;;  %v62_v26 = vsub.s32 0, %v61_v25  ;;  %v66_v27 = vsub.s32 1, %v61_v25  ;;  %s131_s21 = scalar_lea.vmem %s90_s20, 256  ;;  %p136_p9 = scmp.lt.s32.totalorder %s90_s20, %s90_s20 }
  0x1a   :  { %p132_p8 = scmp.ne.s32.totalorder %s90_s20, %s131_s21  ;;  %p137_p10 = scmp.lt.s32.totalorder %s131_s21, %s131_s21 }
  0x1b   :  { %v50_v19 = vadd.f32 %v48_v9, %v42_v16  ;;  %v43_v20 = vadd.f32 %v41_v14, %v35_v17 }
  0x1c   :  { %p138_p11 = por %p137_p10, %p136_p9 }
  0x1d   :  { %v52_v21 = vmax.f32 %v50_v19, 1e-24  ;;  %v51_v23 = vadd.f32 %v49_v18, %v43_v20 }
  0x1e   :  { %p139_p12 = pnand %p138_p11, %p132_p8 }
  0x1f   :  { %105 = vrsqrt.f32 %v52_v21  ;;  %v53_v24 = vmax.f32 %v51_v23, 1e-24 }
  0x21   :  { %107 = vrsqrt.f32 %v53_v24 }
  0x29   :  { %v106_v28 = vpop.eup %105 }
  0x2a   :  { %v63_v29 = vrot.slane %v106_v28, %v62_v26  ;;  %v67_v30 = vrot.slane %v106_v28, %v66_v27 }
  0x2b   :  { %v108_v32 = vpop.eup %107 }
  0x2c   :  { %v76_v33 = vcombine.low %v63_v29, %v67_v30  ;;  %v71_v34 = vrot.slane %v108_v32, %v62_v26  ;;  %v75_v35 = vrot.slane %v108_v32, %v66_v27 }
  0x2e   :  { %v80_v36 = vmul.f32 %v76_v33, %v56_v31  ;;  %v77_v38 = vcombine.low %v71_v34, %v75_v35 }
  0x30   :  { %82 = vst [vmem:[#allocation5] sm:$0xff] %v80_v36  ;;  %v81_v39 = vmul.f32 %v77_v38, %v57_v37 }
  0x32   :  { %83 = vst [vmem:[#allocation5 + $0x8] sm:$0xff] %v81_v39 }
  0x33   :  { %142 = shalt.err (!%p139_p12)
}
  0x34   :  { %s143_s24 = scalar_lea.hbm %s202_s1, 256 }
  0x35   :  { %p144_p13 = scmp.ne.s32.totalorder %s202_s1, %s143_s24  ;;  %p147_p0 = scmp.lt.u32.totalorder %s143_s24, %s202_s1 }
  0x37   :  { %p149_p1 = pnand %p147_p0, %p144_p13 }
  0x39   :  { %152 = shalt.err (!%p149_p1)
}
  0x3a   :  { %95 = dma.vmem_to_hbm [thread:$0]  %s90_s20, 256, %s202_s1, [#allocation4], %s158_s16, %s158_s16, %s159_s17  }
  0x3b   :  { %155 = dma.done.wait [#allocation4], 256  }
  0x3c   :  { %156 = vsyncadd [#allocation4], 4294967040 }
  0x3d   :  { %99 = vsyncpa [#allocation3], 1 }
  0x3e   :  { %100 = vsyncpa [#allocation4], 1 }

</bundles_post_ra>
